<compile_context>
chip_gen: v7x
topology: tpu7x:2x2x1
jax: 0.10.0
libtpu: 0.0.40
codegen_flags: <defaults>
</compile_context>

<pallas_src>
import jax
import jax.numpy as jnp
from jax import lax
from jax.experimental import pallas as pl
from jax.experimental.pallas import tpu as pltpu


def _round_up(a, m):
    return (a + m - 1) // m * m


def _pick_tb(B, D, H, tb_req, x_compute_itemsize):
    """Pick a batch tile: multiple of 128, VMEM-budgeted, and >= 2 grid steps if possible."""
    b_ceil = _round_up(B, 128)
    tb = _round_up(max(int(tb_req), 128), 128)
    tb = min(tb, b_ceil)
    # Per-step working set per batch row: double-buffered x block, f32 (H, tb)
    # activations (conservatively x2 for the elementwise chain), f32 output row.
    bytes_per_row = 2 * D * x_compute_itemsize + 2 * H * 4 + 2 * 4
    budget = 12 * 1024 * 1024
    tb_budget = max(128, (budget // bytes_per_row) // 128 * 128)
    tb = min(tb, tb_budget)
    # Keep >= 2 grid steps when the batch allows it so both v7x TensorCores get work.
    if b_ceil >= 256:
        tb = min(tb, _round_up((b_ceil + 1) // 2, 128))
    return max(tb, 128)


def _discriminator_kernel(x_ref, w1_ref, b1_ref, w2_ref, b2_ref, o_ref):
    # x_ref : (tb, D)   bf16 (or f32, cast in-register)   batch tile
    # w1_ref: (H, D)    bf16   layer-1 weight (PyTorch [out,in] layout, resident)
    # b1_ref: (H, 1)    f32    layer-1 bias column (lane-broadcast)
    # w2_ref: (H, 1)    f32    layer-2 weight column (fused reduction, no M=1 matmul)
    # b2_ref: (1, 1)    f32    layer-2 bias, SMEM scalar
    # o_ref : (1, 1, tb) f32   lane-dense sigmoid outputs for this tile
    xv = x_ref[...]
    if xv.dtype != w1_ref.dtype:
        xv = xv.astype(w1_ref.dtype)                                   # in-register cast
    # Layer 1: contract over D directly (no explicit XLU transpose of the x tile).
    h = lax.dot_general(
        w1_ref[...], xv,
        dimension_numbers=(((1,), (1,)), ((), ())),
        preferred_element_type=jnp.float32)                            # (H, tb)  MXU
    h = h + b1_ref[...]                                                # bias
    h = jnp.where(h > 0, h, 0.2 * h)                                   # LeakyReLU(0.2) VPU
    # Layer 2 fused into the elementwise pass: sublane reduction over H instead of a
    # degenerate (1, H) @ (H, tb) MXU matmul.
    z = jnp.sum(h * w2_ref[...], axis=0, keepdims=True)                # (1, tb)  VPU+XLU
    z = z + b2_ref[0, 0]                                               # SMEM scalar bias
    # sigmoid = 1 / (1 + exp(-z)); exp and approx reciprocal both run on the EUP.
    sig = pl.reciprocal(1.0 + jnp.exp(-z), approx=True)
    o_ref[...] = sig[None].astype(o_ref.dtype)                         # (1, 1, tb)


def discriminator_forward(x, w1, b1, w2, b2, *, tb=8192, compute_dtype=jnp.bfloat16):
    """Forward pass of Discriminator(input_dim=D, nb_units=H).

    x : [B, D] float (ideally already compute_dtype upstream so no extra HBM pass)
    w1: [H, D] (== nn.Linear(D, H).weight)   b1: [H]
    w2: [1, H] (== nn.Linear(H, 1).weight)   b2: [1]
    Returns [B, 1] float32.
    """
    B, D = x.shape
    H = w1.shape[0]

    tb = _pick_tb(B, D, H, tb, jnp.dtype(compute_dtype).itemsize)
    n_steps = pl.cdiv(B, tb)   # ragged last block handled in-grid; no jnp.pad pass over x

    w1_c = jnp.asarray(w1, compute_dtype)                  # (H, D), resident in VMEM
    b1_c = jnp.asarray(b1, jnp.float32).reshape(H, 1)      # (H, 1)
    w2_c = jnp.asarray(w2, jnp.float32).reshape(H, 1)      # (H, 1) column for fused layer 2
    b2_c = jnp.asarray(b2, jnp.float32).reshape(1, 1)      # (1, 1) -> SMEM scalar

    out3 = pl.pallas_call(
        _discriminator_kernel,
        out_shape=jax.ShapeDtypeStruct((n_steps, 1, tb), jnp.float32),
        grid_spec=pltpu.PrefetchScalarGridSpec(
            num_scalar_prefetch=0,
            grid=(n_steps,),
            in_specs=[
                pl.BlockSpec((tb, D), lambda i: (i, 0)),                 # x tile (streamed)
                pl.BlockSpec((H, D), lambda i: (0, 0)),                  # W1 (resident)
                pl.BlockSpec((H, 1), lambda i: (0, 0)),                  # b1
                pl.BlockSpec((H, 1), lambda i: (0, 0)),                  # w2 column
                pl.BlockSpec(memory_space=pltpu.MemorySpace.SMEM),       # b2 scalar
            ],
            out_specs=pl.BlockSpec((1, 1, tb), lambda i: (i, 0, 0)),     # lane-dense row
        ),
        compiler_params=pltpu.CompilerParams(
            dimension_semantics=("parallel",),
            vmem_limit_bytes=32 * 1024 * 1024,
        ),
    )(x, w1_c, b1_c, w2_c, b2_c)

    # (n_steps, 1, tb) row-major == original batch order; slice off ragged tail.
    return out3.reshape(n_steps * tb, 1)[:B]


def _reference(x, w1, b1, w2, b2, compute_dtype=jnp.bfloat16):
    # Same precision recipe as the kernel (bf16 inputs, f32 accumulation).
    xb = x.astype(compute_dtype)
    w1b = w1.astype(compute_dtype)
    h = jnp.dot(xb, w1b.T, preferred_element_type=jnp.float32) + b1[None, :]
    h = jnp.where(h > 0, h, 0.2 * h)
    z = jnp.dot(h, w2.T.astype(jnp.float32), preferred_element_type=jnp.float32) + b2[None, :]
    return 1.0 / (1.0 + jnp.exp(-z))


if __name__ == "__main__":
    # Small shapes consistent with the module: Discriminator(input_dim=64, nb_units=128).
    # Odd batch (300) exercises the multi-step parallel grid and the ragged last block
    # (256 + 44 rows) without any wrapper-side padding pass.
    B, D, H = 300, 64, 128

    key = jax.random.PRNGKey(0)
    kx, kw1, kb1, kw2, kb2 = jax.random.split(key, 5)

    x_f32 = jax.random.normal(kx, (B, D), dtype=jnp.float32)
    x = x_f32.astype(jnp.bfloat16)   # x "produced in compute_dtype upstream"

    # PyTorch-style uniform init bounds (1/sqrt(fan_in)); PyTorch weight layouts.
    bound1 = 1.0 / (D ** 0.5)
    w1 = jax.random.uniform(kw1, (H, D), minval=-bound1, maxval=bound1, dtype=jnp.float32)
    b1 = jax.random.uniform(kb1, (H,), minval=-bound1, maxval=bound1, dtype=jnp.float32)
    bound2 = 1.0 / (H ** 0.5)
    w2 = jax.random.uniform(kw2, (1, H), minval=-bound2, maxval=bound2, dtype=jnp.float32)
    b2 = jax.random.uniform(kb2, (1,), minval=-bound2, maxval=bound2, dtype=jnp.float32)

    out = discriminator_forward(x, w1, b1, w2, b2)   # default tb clamps to 256 -> 2 grid steps
    out = jax.block_until_ready(out)

    ref = _reference(x_f32, w1, b1, w2, b2)
    assert out.shape == (B, 1)
    err = float(jnp.max(jnp.abs(out - ref)))
    assert err < 2e-3, f"mismatch vs reference: max abs err {err}"

    print("KERNEL_OK")
</pallas_src>

<mosaic_0001>
module attributes {stable_mosaic.version = 11 : i64} {
  func.func @_discriminator_kernel(%arg0: i32, %arg1: memref<256x64xbf16, #tpu.memory_space<vmem>>, %arg2: memref<128x64xbf16, #tpu.memory_space<vmem>>, %arg3: memref<128x1xf32, #tpu.memory_space<vmem>>, %arg4: memref<128x1xf32, #tpu.memory_space<vmem>>, %arg5: memref<1x1xf32, #tpu.memory_space<smem>>, %arg6: memref<1x1x256xf32, #tpu.memory_space<vmem>>) attributes {dimension_semantics = [#tpu.dimension_semantics<parallel>], iteration_bounds = array<i64: 2>, scalar_prefetch = 0 : i64, scratch_operands = 0 : i64, tpu.core_type = #tpu.core_type<tc>, window_params = [{transform_indices = @transform_0, window_bounds = array<i64: 256, 64>}, {pipeline_mode = #tpu.pipeline_mode<synchronous>, transform_indices = @transform_1, window_bounds = array<i64: 128, 64>}, {pipeline_mode = #tpu.pipeline_mode<synchronous>, transform_indices = @transform_2, window_bounds = array<i64: 128, 1>}, {pipeline_mode = #tpu.pipeline_mode<synchronous>, transform_indices = @transform_3, window_bounds = array<i64: 128, 1>}, {transform_indices = @transform_4, window_bounds = array<i64: 1, 1>}, {transform_indices = @transform_5, window_bounds = array<i64: 1, 1, 256>}]} {
    %c0 = arith.constant 0 : index
    %c0_0 = arith.constant 0 : index
    %0 = vector.load %arg1[%c0, %c0_0] : memref<256x64xbf16, #tpu.memory_space<vmem>>, vector<256x64xbf16>
    %c0_1 = arith.constant 0 : index
    %c0_2 = arith.constant 0 : index
    %1 = vector.load %arg2[%c0_1, %c0_2] : memref<128x64xbf16, #tpu.memory_space<vmem>>, vector<128x64xbf16>
    %cst = arith.constant dense<0.000000e+00> : vector<128x256xf32>
    %2 = tpu.matmul %1, %0, %cst {dimension_numbers = #tpu.dot_dimension_numbers<[1], [1], [0], [0], [0, 0, 1, 0], [], []>} : vector<128x64xbf16>, vector<256x64xbf16>, vector<128x256xf32> -> vector<128x256xf32>
    %c0_3 = arith.constant 0 : index
    %c0_4 = arith.constant 0 : index
    %3 = vector.load %arg3[%c0_3, %c0_4] : memref<128x1xf32, #tpu.memory_space<vmem>>, vector<128x1xf32>
    %4 = vector.broadcast %3 : vector<128x1xf32> to vector<128x256xf32>
    %5 = arith.addf %2, %4 : vector<128x256xf32>
    %cst_5 = arith.constant 0.000000e+00 : f32
    %6 = vector.broadcast %cst_5 : f32 to vector<128x256xf32>
    %7 = arith.cmpf ogt, %5, %6 : vector<128x256xf32>
    %cst_6 = arith.constant 2.000000e-01 : f32
    %8 = vector.broadcast %cst_6 : f32 to vector<128x256xf32>
    %9 = arith.mulf %8, %5 : vector<128x256xf32>
    %10 = arith.select %7, %5, %9 : vector<128x256xi1>, vector<128x256xf32>
    %c0_7 = arith.constant 0 : index
    %c0_8 = arith.constant 0 : index
    %11 = vector.load %arg4[%c0_7, %c0_8] : memref<128x1xf32, #tpu.memory_space<vmem>>, vector<128x1xf32>
    %12 = vector.broadcast %11 : vector<128x1xf32> to vector<128x256xf32>
    %13 = arith.mulf %10, %12 : vector<128x256xf32>
    %cst_9 = arith.constant dense<0.000000e+00> : vector<256xf32>
    %14 = vector.multi_reduction <add>, %13, %cst_9 [0] : vector<128x256xf32> to vector<256xf32>
    %15 = vector.shape_cast %14 : vector<256xf32> to vector<1x256xf32>
    %c0_10 = arith.constant 0 : index
    %c0_11 = arith.constant 0 : index
    %16 = memref.load %arg5[%c0_10, %c0_11] : memref<1x1xf32, #tpu.memory_space<smem>>
    %17 = vector.broadcast %16 : f32 to vector<1x256xf32>
    %18 = arith.addf %15, %17 : vector<1x256xf32>
    %cst_12 = arith.constant 0.000000e+00 : f32
    %19 = vector.broadcast %cst_12 : f32 to vector<1x256xf32>
    %20 = arith.subf %19, %18 : vector<1x256xf32>
    %21 = math.exp %20 : vector<1x256xf32>
    %cst_13 = arith.constant 1.000000e+00 : f32
    %22 = vector.broadcast %cst_13 : f32 to vector<1x256xf32>
    %23 = arith.addf %22, %21 : vector<1x256xf32>
    %24 = tpu.reciprocal %23 {approx = true} : vector<1x256xf32> -> vector<1x256xf32>
    %25 = vector.shape_cast %24 : vector<1x256xf32> to vector<1x1x256xf32>
    %c0_14 = arith.constant 0 : index
    %c0_15 = arith.constant 0 : index
    %c0_16 = arith.constant 0 : index
    %26 = vector.load %arg6[%c0_14, %c0_15, %c0_16] : memref<1x1x256xf32, #tpu.memory_space<vmem>>, vector<1x1x256xf32>
    tpu.vector_store %arg6[%c0_14, %c0_15, %c0_16], %25 {strides = array<i32>} : memref<1x1x256xf32, #tpu.memory_space<vmem>>, vector<1x1x256xf32>,
    return
  }
  func.func @transform_0(%arg0: i32) -> (i32, i32) {
    %c0_i32 = arith.constant 0 : i32
    %c0_i32_0 = arith.constant 0 : i32
    return %arg0, %c0_i32 : i32, i32
  }
  func.func @transform_1(%arg0: i32) -> (i32, i32) {
    %c0_i32 = arith.constant 0 : i32
    %c0_i32_0 = arith.constant 0 : i32
    %c0_i32_1 = arith.constant 0 : i32
    return %c0_i32, %c0_i32_0 : i32, i32
  }
  func.func @transform_2(%arg0: i32) -> (i32, i32) {
    %c0_i32 = arith.constant 0 : i32
    %c0_i32_0 = arith.constant 0 : i32
    %c0_i32_1 = arith.constant 0 : i32
    return %c0_i32, %c0_i32_0 : i32, i32
  }
  func.func @transform_3(%arg0: i32) -> (i32, i32) {
    %c0_i32 = arith.constant 0 : i32
    %c0_i32_0 = arith.constant 0 : i32
    %c0_i32_1 = arith.constant 0 : i32
    return %c0_i32, %c0_i32_0 : i32, i32
  }
  func.func @transform_4(%arg0: i32) -> (i32, i32) {
    %c0_i32 = arith.constant 0 : i32
    %c0_i32_0 = arith.constant 0 : i32
    %c0_i32_1 = arith.constant 0 : i32
    return %c0_i32, %c0_i32_0 : i32, i32
  }
  func.func @transform_5(%arg0: i32) -> (i32, i32, i32) {
    %c0_i32 = arith.constant 0 : i32
    %c0_i32_0 = arith.constant 0 : i32
    %c0_i32_1 = arith.constant 0 : i32
    return %arg0, %c0_i32, %c0_i32_0 : i32, i32, i32
  }
}

</mosaic_0001>

<bundles_post_ra>
// kernel: tpu_custom_call.1
= control target key start
LH: loop header
LB: loop body
LE: loop exit
PB: predicated region body
PF: predicated region fallthrough
CT: control target
= control target key end

     0   :  { %s1770_s0 = inlined_call_operand.vmem [shape: bf16[300,64], index: 0, kind: input, shape index: {}]   ;;  %s1771_s1 = inlined_call_operand.vmem [shape: bf16[128,64], index: 1, kind: input, shape index: {}]   ;;  %s1772_s2 = inlined_call_operand.vmem [shape: f32[128,1], index: 2, kind: input, shape index: {}]   ;;  %s1773_s3 = inlined_call_operand.vmem [shape: f32[128,1], index: 3, kind: input, shape index: {}]   ;;  %s1774_s4 = inlined_call_operand.<no memory space> [shape: f32[1,1], index: 4, kind: input, shape index: {}]   ;;  %s1775_s5 = inlined_call_operand.hbm [shape: f32[2,1,256], index: 5, kind: output, shape index: {}]  }
   0x1   :  { %10 = sst [smem:[#allocation2]] %s1774_s4 }
   0x2   :  { %11 = vsyncpa [#allocation4], 0 }
   0x3   :  { %13 = vsyncpa [#allocation4 + $0x1], 0  ;;  %s1358_s20 = smov 0   ;;  %s1360_s21 = smov 0  }
   0x4   :  { %s1362_s22 = smov 0   ;;  %s1364_s23 = smov 0  }
   0x5 LB: > { %s1073_s4 = sadd.s32 4294967295, %s1320_s23   ;;  %s1074_s24 = sadd.s32 4294967294, %s1320_s23   ;;  %s1320_s23 = sphi %s1364_s23, %s1781_s23   ;;  %s1316_s22 = sphi %s1362_s22, %s1780_s22   ;;  %s1312_s21 = sphi %s1360_s21, %s1779_s21   ;;  %s1308_s20 = sphi %s1358_s20, %s1778_s20  }
   0x6   : > { %s1381_s25 = sadd.s32 1, %s1320_s23   ;;  %s136_s26 = sadd.s32 1, %s1316_s22 }
   0x7   : > { %s133_s27 = ssub.s32 %s1320_s23, %s1381_s25  ;;  %p146_p0 = scmp.ne.s32.totalorder %s1316_s22, %s1312_s21 }
   0x8   : > { %p134_p1 = scmp.eq.s32.totalorder %s133_s27, 0  ;;  %p147_p2 = scmp.eq.s32.totalorder %s1073_s4, 1 }
   0x9   : > { %p152_p3 = scmp.ne.s32.totalorder %s1312_s21, %s1308_s20  ;;  %p153_p4 = scmp.eq.s32.totalorder %s1074_s24, 1 }
   0xa   : > { %s1391_s28 = scalar_select %p134_p1, %s1316_s22, %s136_s26  }
   0xb   : > { %p1393_p5 = por %p147_p2, %p146_p0  ;;  %p1397_p6 = por %p153_p4, %p152_p3 }
   0xc   : > { %p1077_p7 = scmp.ge.s32.totalorder %s1320_s23, 1  ;;  %p200_p8 = scmp.lt.s32.totalorder %s1320_s23, 3 }
   0xe   : > { %p201_p9 = pnand %p1077_p7, %p200_p8 }
   0xf   : > { %s1403_s6 = sshll.u32 (!%p201_p9), %s1073_s4, 5  ;;  %vm511_vm0 = vcmask (!%p201_p9), 523264   ;;  %v1409_v0 = vld [vmem:[%s1771_s1] sm:$0xff] (!%p201_p9)   ;;  %v1322_v2 = vmov (!%p201_p9), 0   ;;  %v297_v4 = vld [vmem:[%s1772_s2 + $0x10] sm:$0xff] (!%p201_p9)  ;;  %v296_v5 = vld [vmem:[%s1772_s2 + $0x8] sm:$0xff] (!%p201_p9) }
  0x10   : > { %204 = sbr.rel (%p201_p9) target bundleno = 424 (0x1a8), region = 40  ;;  %p237_p10 = scmp.lt.s32.totalorder (!%p201_p9), %s1403_s6, 37  ;;  %v1414_v1 = vld [vmem:[%s1771_s1 + $0x20] sm:$0xff] (!%p201_p9)   ;;  %1135 = vmatprep.mubr.msk.bf16.mxu0 (!%p201_p9), %vm511_vm0, %v1409_v0  ;;  %1224 = vset.pattern.permute.xlu0 (!%p201_p9), %v1322_v2  ;;  %v298_v14 = vld [vmem:[%s1772_s2 + $0x18] sm:$0xff] (!%p201_p9)  ;;  %v794_v18 = vld [vmem:[%s1773_s3 + $0x8] sm:$0xff] (!%p201_p9) }
  0x11   : > { %1143 = vmatprep.mubr.msk.bf16.mxu1 (!%p201_p9), %vm511_vm0, %v1414_v1  ;;  %v295_v3 = vld [vmem:[%s1772_s2] sm:$0xff] (!%p201_p9)  ;;  %1225 = vset.pattern.permute.xlu1 (!%p201_p9), %v1322_v2  ;;  %v795_v21 = vld [vmem:[%s1773_s3 + $0x10] sm:$0xff] (!%p201_p9)  ;;  %v300_v22 = vld [vmem:[%s1772_s2 + $0x28] sm:$0xff] (!%p201_p9)  ;;  %s963_s9 = sld [smem:[#allocation2]] (!%p201_p9)  ;;  %s229_s10 = sand.u32 (!%p201_p9), 1, %s1312_s21  }
  0x12   : > { %313 = vperm.xlu0 (!%p201_p9), %1224, %v295_v3   ;;  %323 = vperm.xlu1 (!%p201_p9), %1225, %v297_v4   ;;  %v793_v15 = vld [vmem:[%s1773_s3] sm:$0xff] (!%p201_p9)  ;;  %v796_v25 = vld [vmem:[%s1773_s3 + $0x18] sm:$0xff] (!%p201_p9)  ;;  %v301_v26 = vld [vmem:[%s1772_s2 + $0x30] sm:$0xff] (!%p201_p9)  ;;  %s1001_s17 = scalar_lea.sflag (!%p201_p9), [#allocation4], %s229_s10  ;;  %s1324_s4 = smov (!%p201_p9), [#allocation3]  }
  0x13   : > { %v299_v19 = vld [vmem:[%s1772_s2 + $0x20] sm:$0xff] (!%p201_p9)  ;;  %v302_v29 = vld [vmem:[%s1772_s2 + $0x38] sm:$0xff] (!%p201_p9)  ;;  %v798_v32 = vld [vmem:[%s1773_s3 + $0x28] sm:$0xff] (!%p201_p9) }
  0x14   : > { %v797_v28 = vld [vmem:[%s1773_s3 + $0x20] sm:$0xff] (!%p201_p9)  ;;  %v799_v35 = vld [vmem:[%s1773_s3 + $0x30] sm:$0xff] (!%p201_p9)  ;;  %v304_v36 = vld [vmem:[%s1772_s2 + $0x48] sm:$0xff] (!%p201_p9) }
  0x15   : > { %v303_v33 = vld [vmem:[%s1772_s2 + $0x40] sm:$0xff] (!%p201_p9)  ;;  %v800_v39 = vld [vmem:[%s1773_s3 + $0x38] sm:$0xff] (!%p201_p9)  ;;  %v305_v40 = vld [vmem:[%s1772_s2 + $0x50] sm:$0xff] (!%p201_p9) }
  0x16   : > { %318 = vperm.xlu0 (!%p201_p9), %1224, %v296_v5   ;;  %328 = vperm.xlu1 (!%p201_p9), %1225, %v298_v14   ;;  %v801_v42 = vld [vmem:[%s1773_s3 + $0x40] sm:$0xff] (!%p201_p9)  ;;  %v306_v43 = vld [vmem:[%s1772_s2 + $0x58] sm:$0xff] (!%p201_p9)  ;;  %v802_v46 = vld [vmem:[%s1773_s3 + $0x48] sm:$0xff] (!%p201_p9) }
  0x17   : > { %s238_s11 = scalar_select %p237_p10, %s1403_s6, 37  ;;  %v307_v47 = vld [vmem:[%s1772_s2 + $0x60] sm:$0xff]  ;;  %v803_v49 = vld [vmem:[%s1773_s3 + $0x50] sm:$0xff]  ;;  %v308_v50 = vld [vmem:[%s1772_s2 + $0x68] sm:$0xff] }
  0x18   : > { %v804_v52 = vld [vmem:[%s1773_s3 + $0x58] sm:$0xff]  ;;  %v309_v53 = vld [vmem:[%s1772_s2 + $0x70] sm:$0xff]  ;;  %v805_v54 = vld [vmem:[%s1773_s3 + $0x60] sm:$0xff] }
  0x19   : > { %s1080_s16 = sshll.u32 %s238_s11, 2  ;;  %v310_v55 = vld [vmem:[%s1772_s2 + $0x78] sm:$0xff]  ;;  %v1244_v56 = vld [vmem:[%s1771_s1 + $0x8] sm:$0xff]   ;;  %v807_v59 = vld [vmem:[%s1773_s3 + $0x70] sm:$0xff]  ;;  %s1078_s11 = sshll.u32 %s229_s10, 1 }
  0x1a   : > { %s1430_s19 = scalar_lea.vmem %s1770_s0, %s1080_s16  ;;  %811 = vperm.xlu0 %1224, %v793_v15   ;;  %816 = vperm.xlu1 %1225, %v794_v18   ;;  %v1245_v57 = vld [vmem:[%s1771_s1 + $0x28] sm:$0xff]   ;;  %v808_v60 = vld [vmem:[%s1773_s3 + $0x78] sm:$0xff]  ;;  %v1246_v61 = vld [vmem:[%s1771_s1 + $0x10] sm:$0xff]   ;;  %s231_s12 = scalar_lea.vmem [#allocation3], %s1078_s11 }
  0x1b   : > { %v1226_v6 = vld [vmem:[%s1430_s19 + $0x40] sm:$0xff]   ;;  %v1228_v8 = vld [vmem:[%s1430_s19 + $0x48] sm:$0xff]   ;;  %v1230_v12 = vld [vmem:[%s1430_s19 + $0x50] sm:$0xff]   ;;  %s1015_s13 = sshll.u32 %s231_s12, 4  ;;  %s1728_s16 = scalar_lea.hbm %s1775_s5, %s1403_s6  ;;  %s1730_s13 = int_to_ptr.vmem [resolvable:$true] %s1015_s13 }
  0x1c   : > { %v1227_v7 = vld [vmem:[%s1430_s19] sm:$0xff]   ;;  %1167 = vmatprep.subr.msk.bf16.mxu0 %vm511_vm0, %v1226_v6  ;;  %1168 = vmatprep.subr.msk.bf16.mxu1 %vm511_vm0, %v1226_v6  ;;  %v1229_v10 = vld [vmem:[%s1430_s19 + $0x8] sm:$0xff]   ;;  %v1231_v13 = vld [vmem:[%s1430_s19 + $0x10] sm:$0xff]   ;;  %s1258_s18 = scalar_lea.vmem %s1730_s13, 32 }
  0x1d   : > { %v537_v9 = vsel %vm511_vm0, %v1227_v7, 0  ;;  %v540_v11 = vsel %vm511_vm0, %v1229_v10, 0  ;;  %v543_v16 = vsel %vm511_vm0, %v1231_v13, 0  ;;  %v1232_v17 = vld [vmem:[%s1430_s19 + $0x58] sm:$0xff]   ;;  %v1234_v24 = vld [vmem:[%s1430_s19 + $0x60] sm:$0xff]   ;;  %v1236_v31 = vld [vmem:[%s1430_s19 + $0x68] sm:$0xff]   ;;  %p1259_p11 = scmp.ne.s32.totalorder %s1730_s13, %s1258_s18 }
  0x1e   : > { %1120 = vmatpush3.bf16.xpose.msra.mxu0 %v537_v9  ;;  %1159 = vmatpush3.bf16.xpose.msra.mxu1 %v537_v9  ;;  %v1233_v20 = vld [vmem:[%s1430_s19 + $0x18] sm:$0xff]   ;;  %v1235_v27 = vld [vmem:[%s1430_s19 + $0x20] sm:$0xff]   ;;  %v1237_v34 = vld [vmem:[%s1430_s19 + $0x28] sm:$0xff]  }
  0x1f   : > { %1169 = vmatprep.subr.msk.bf16.mxu0 %vm511_vm0, %v1228_v8  ;;  %1170 = vmatprep.subr.msk.bf16.mxu1 %vm511_vm0, %v1228_v8  ;;  %v546_v23 = vsel %vm511_vm0, %v1233_v20, 0  ;;  %v549_v30 = vsel %vm511_vm0, %v1235_v27, 0  ;;  %v552_v37 = vsel %vm511_vm0, %v1237_v34, 0  ;;  %v1238_v38 = vld [vmem:[%s1430_s19 + $0x70] sm:$0xff]   ;;  %v1240_v45 = vld [vmem:[%s1430_s19 + $0x78] sm:$0xff]   ;;  %v806_v58 = vld [vmem:[%s1773_s3 + $0x68] sm:$0xff]  ;;  %p1260_p12 = pnand %p1259_p11, %p1393_p5 }
  0x20   : > { %333 = vperm.xlu0 %1224, %v299_v19   ;;  %821 = vperm.xlu1 %1225, %v795_v21   ;;  %v1239_v41 = vld [vmem:[%s1430_s19 + $0x30] sm:$0xff]   ;;  %v1241_v48 = vld [vmem:[%s1430_s19 + $0x38] sm:$0xff]   ;;  %s1262_s19 = sshll.u32 %s1324_s4, 4  ;;  %s1263_s19 = int_to_ptr.vmem [resolvable:$false] %s1262_s19 }
  0x21   : > { %v555_v44 = vsel %vm511_vm0, %v1239_v41, 0  ;;  %v558_v51 = vsel %vm511_vm0, %v1241_v48, 0  ;;  %v1247_v62 = vld [vmem:[%s1771_s1 + $0x30] sm:$0xff]   ;;  %v1248_v63 = vld [vmem:[%s1771_s1 + $0x18] sm:$0xff]   ;;  %p1261_p13 = pneg %p1260_p12  ;;  %s1264_s24 = scalar_lea.vmem %s1263_s19, 64 }
  0x22   : > { %p1265_p0 = scmp.lt.s32.totalorder %s1730_s13, %s1263_s19  ;;  %p1266_p1 = scmp.lt.s32.totalorder %s1264_s24, %s1258_s18 }
  0x24   : > { %338 = vperm.xlu0 %1224, %v300_v22   ;;  %826 = vperm.xlu1 %1225, %v796_v25   ;;  %p1267_p2 = por %p1266_p1, %p1265_p0 }
  0x26   : > { %1122 = vmatpush3.bf16.xpose.msra.mxu0 %v540_v11  ;;  %1160 = vmatpush3.bf16.xpose.msra.mxu1 %v540_v11  ;;  %p1268_p3 = pnand %p1267_p2, %p1261_p13 }
  0x27   : > { %1171 = vmatprep.subr.msk.bf16.mxu0 %vm511_vm0, %v1230_v12  ;;  %1172 = vmatprep.subr.msk.bf16.mxu1 %vm511_vm0, %v1230_v12 }
  0x28   : > { %343 = vperm.xlu0 %1224, %v301_v26   ;;  %831 = vperm.xlu1 %1225, %v797_v28  }
  0x2c   : > { %348 = vperm.xlu0 %1224, %v302_v29   ;;  %836 = vperm.xlu1 %1225, %v798_v32  }
  0x2e   : > { %1124 = vmatpush3.bf16.xpose.msra.mxu0 %v543_v16  ;;  %1161 = vmatpush3.bf16.xpose.msra.mxu1 %v543_v16 }
  0x2f   : > { %1173 = vmatprep.subr.msk.bf16.mxu0 %vm511_vm0, %v1232_v17  ;;  %1174 = vmatprep.subr.msk.bf16.mxu1 %vm511_vm0, %v1232_v17 }
  0x30   : > { %353 = vperm.xlu0 %1224, %v303_v33   ;;  %841 = vperm.xlu1 %1225, %v799_v35  }
  0x34   : > { %358 = vperm.xlu0 %1224, %v304_v36   ;;  %846 = vperm.xlu1 %1225, %v800_v39  }
  0x36   : > { %1126 = vmatpush3.bf16.xpose.msra.mxu0 %v546_v23  ;;  %1162 = vmatpush3.bf16.xpose.msra.mxu1 %v546_v23 }
  0x37   : > { %1175 = vmatprep.subr.msk.bf16.mxu0 %vm511_vm0, %v1234_v24  ;;  %1176 = vmatprep.subr.msk.bf16.mxu1 %vm511_vm0, %v1234_v24 }
  0x38   : > { %363 = vperm.xlu0 %1224, %v305_v40   ;;  %851 = vperm.xlu1 %1225, %v801_v42  }
  0x3c   : > { %368 = vperm.xlu0 %1224, %v306_v43   ;;  %856 = vperm.xlu1 %1225, %v802_v46  }
  0x3e   : > { %1128 = vmatpush3.bf16.xpose.msra.mxu0 %v549_v30  ;;  %1163 = vmatpush3.bf16.xpose.msra.mxu1 %v549_v30 }
  0x3f   : > { %1177 = vmatprep.subr.msk.bf16.mxu0 %vm511_vm0, %v1236_v31  ;;  %1178 = vmatprep.subr.msk.bf16.mxu1 %vm511_vm0, %v1236_v31 }
  0x40   : > { %373 = vperm.xlu0 %1224, %v307_v47   ;;  %861 = vperm.xlu1 %1225, %v803_v49  }
  0x44   : > { %378 = vperm.xlu0 %1224, %v308_v50   ;;  %866 = vperm.xlu1 %1225, %v804_v52  }
  0x46   : > { %1130 = vmatpush3.bf16.xpose.msra.mxu0 %v552_v37  ;;  %1164 = vmatpush3.bf16.xpose.msra.mxu1 %v552_v37 }
  0x47   : > { %1179 = vmatprep.subr.msk.bf16.mxu0 %vm511_vm0, %v1238_v38  ;;  %1180 = vmatprep.subr.msk.bf16.mxu1 %vm511_vm0, %v1238_v38 }
  0x48   : > { %383 = vperm.xlu0 %1224, %v309_v53   ;;  %871 = vperm.xlu1 %1225, %v805_v54  }
  0x4c   : > { %388 = vperm.xlu0 %1224, %v310_v55   ;;  %876 = vperm.xlu1 %1225, %v806_v58  }
  0x4e   : > { %1132 = vmatpush3.bf16.xpose.msra.mxu0 %v555_v44  ;;  %1165 = vmatpush3.bf16.xpose.msra.mxu1 %v555_v44 }
  0x4f   : > { %1181 = vmatprep.subr.msk.bf16.mxu0 %vm511_vm0, %v1240_v45  ;;  %1182 = vmatprep.subr.msk.bf16.mxu1 %vm511_vm0, %v1240_v45 }
  0x50   : > { %881 = vperm.xlu0 %1224, %v807_v59   ;;  %886 = vperm.xlu1 %1225, %v808_v60  }
  0x56   : > { %1134 = vmatpush3.bf16.xpose.msra.mxu0 %v558_v51  ;;  %1166 = vmatpush3.bf16.xpose.msra.mxu1 %v558_v51 }
  0x5d   : > { %1136 = vmatmul.mubr.msk.bf16.vlgmr.msra.gmra.mrb[0].mxu0 %vm511_vm0, %v1409_v0  ;;  %1144 = vmatmul.mubr.msk.bf16.vlgmr.msra.gmra.mrb[0].mxu1 %vm511_vm0, %v1414_v1  ;;  %v1249_v0 = vld [vmem:[%s1771_s1 + $0x38] sm:$0xff]  }
  0x5e   : > { %1137 = vmatprep.mubr.msk.bf16.mxu0 %vm511_vm0, %v1244_v56  ;;  %1145 = vmatprep.mubr.msk.bf16.mxu1 %vm511_vm0, %v1245_v57 }
  0x65   : > { %1138 = vmatmul.mubr.msk.bf16.gmra.mrb[4].mxu0 %vm511_vm0, %v1244_v56  ;;  %1146 = vmatmul.mubr.msk.bf16.gmra.mrb[4].mxu1 %vm511_vm0, %v1245_v57 }
  0x66   : > { %1139 = vmatprep.mubr.msk.bf16.mxu0 %vm511_vm0, %v1246_v61  ;;  %1147 = vmatprep.mubr.msk.bf16.mxu1 %vm511_vm0, %v1247_v62 }
  0x6d   : > { %1140 = vmatmul.mubr.msk.bf16.gmra.mrb[8].mxu0 %vm511_vm0, %v1246_v61  ;;  %1148 = vmatmul.mubr.msk.bf16.gmra.mrb[8].mxu1 %vm511_vm0, %v1247_v62 }
  0x6e   : > { %1141 = vmatprep.mubr.msk.bf16.mxu0 %vm511_vm0, %v1248_v63  ;;  %1149 = vmatprep.mubr.msk.bf16.mxu1 %vm511_vm0, %v1249_v0 }
  0x75   : > { %1142 = vmatmul.mubr.msk.bf16.gmra.mrb[12].mxu0 %vm511_vm0, %v1248_v63  ;;  %1150 = vmatmul.mubr.msk.bf16.gmra.mrb[12].mxu1 %vm511_vm0, %v1249_v0 }
  0x91   : > { %v314_v1 = vpop.permute.xlu0 %313  ;;  %v324_v2 = vpop.permute.xlu1 %323 }
  0x95   : > { %v319_v3 = vpop.permute.xlu0 %318  ;;  %v1596_v4 = vpop.permute.xlu1 %328 }
  0x99   : > { %v812_v5 = vpop.permute.xlu0 %811  ;;  %v817_v6 = vpop.permute.xlu1 %816 }
  0x9f   : > { %v1598_v7 = vpop.permute.xlu0 %333  ;;  %v1600_v8 = vpop.permute.xlu1 %821 }
  0xa3   : > { %v1602_v9 = vpop.permute.xlu0 %338  ;;  %v1604_v10 = vpop.permute.xlu1 %826 }
  0xa7   : > { %v1606_v11 = vpop.permute.xlu0 %343  ;;  %v1608_v12 = vpop.permute.xlu1 %831 }
  0xab   : > { %v1610_v13 = vpop.permute.xlu0 %348  ;;  %v1612_v14 = vpop.permute.xlu1 %836 }
  0xaf   : > { %v1614_v15 = vpop.permute.xlu0 %353  ;;  %v1616_v16 = vpop.permute.xlu1 %841 }
  0xb3   : > { %v1626_v31 = vpop.permute.xlu0 %358  ;;  %v1628_v32 = vpop.permute.xlu1 %846 }
  0xb7   : > { %v1639_v57 = vpop.permute.xlu0 %363  ;;  %v1642_v60 = vpop.permute.xlu1 %851 }
 0x130   : > { %v618_v17 = vpop.f32.mrb[0].mxu0  ;;  %v1618_v18 = vpop.f32.mrb[0].mxu1 }
 0x131   : > { %v619_v19 = vadd.f32 %v618_v17, %v314_v1  ;;  %v620_v20 = vpop.f32.mrb[1].mxu0  ;;  %v1620_v21 = vpop.f32.mrb[1].mxu1 }
 0x132   : > { %v621_v22 = vadd.f32 %v620_v20, %v314_v1  ;;  %v622_v23 = vpop.f32.mrb[2].mxu0  ;;  %v1622_v24 = vpop.f32.mrb[2].mxu1 }
 0x133   : > { %vm697_vm1 = vcmp.gt.f32.partialorder %v619_v19, 0.0  ;;  %v729_v25 = vmul.f32 0.2, %v619_v19  ;;  %v623_v26 = vadd.f32 %v622_v23, %v319_v3  ;;  %v624_v27 = vpop.f32.mrb[3].mxu0  ;;  %v1624_v28 = vpop.f32.mrb[3].mxu1 }
 0x134   : > { %v730_v30 = vmul.f32 0.2, %v621_v22  ;;  %vm698_vm2 = vcmp.gt.f32.partialorder %v621_v22, 0.0  ;;  %v625_v34 = vadd.f32 %v624_v27, %v319_v3 }
 0x135   : > { %v761_v29 = vsel %vm697_vm1, %v619_v19, %v729_v25  ;;  %vm699_vm3 = vcmp.gt.f32.partialorder %v623_v26, 0.0  ;;  %v731_v33 = vmul.f32 0.2, %v623_v26  ;;  %v659_v25 = vadd.f32 %v1618_v18, %v1614_v15 }
 0x136   : > { %v889_v37 = vmul.f32 %v812_v5, %v761_v29  ;;  %v762_v42 = vsel %vm698_vm2, %v621_v22, %v730_v30  ;;  %vm700_vm4 = vcmp.gt.f32.partialorder %v625_v34, 0.0  ;;  %v732_v44 = vmul.f32 0.2, %v625_v34 }
 0x137   : > { %v763_v38 = vsel %vm699_vm3, %v623_v26, %v731_v33  ;;  %v890_v52 = vmul.f32 %v812_v5, %v762_v42  ;;  %v1658_v33 = vpop.permute.xlu0 %368  ;;  %vm713_vm10 = vcmp.gt.f32.partialorder %v659_v25, 0.0  ;;  %v745_v42 = vmul.f32 0.2, %v659_v25 }
 0x138   : > { %v628_v35 = vpop.f32.mrb[4].mxu0  ;;  %v1630_v36 = vpop.f32.mrb[4].mxu1  ;;  %v891_v43 = vmul.f32 %v817_v6, %v763_v38  ;;  %v764_v50 = vsel %vm700_vm4, %v625_v34, %v732_v44  ;;  %v663_v34 = vadd.f32 %v1622_v24, %v1626_v31 }
 0x139   : > { %v629_v39 = vadd.f32 %v628_v35, %v324_v2  ;;  %v630_v40 = vpop.f32.mrb[5].mxu0  ;;  %v1632_v41 = vpop.f32.mrb[5].mxu1  ;;  %v892_v53 = vmul.f32 %v817_v6, %v764_v50 }
 0x13a   : > { %v632_v45 = vpop.f32.mrb[6].mxu0  ;;  %v1634_v46 = vpop.f32.mrb[6].mxu1  ;;  %v921_v49 = vadd.f32 %v891_v43, %v889_v37  ;;  %v631_v54 = vadd.f32 %v630_v40, %v324_v2  ;;  %vm715_vm13 = vcmp.gt.f32.partialorder %v663_v34, 0.0 }
 0x13b   : > { %vm701_vm5 = vcmp.gt.f32.partialorder %v629_v39, 0.0  ;;  %v634_v47 = vpop.f32.mrb[7].mxu0  ;;  %v1636_v48 = vpop.f32.mrb[7].mxu1  ;;  %v733_v51 = vmul.f32 0.2, %v629_v39  ;;  %v633_v56 = vadd.f32 %v632_v45, %v1596_v4  ;;  %v942_v58 = vadd.f32 %v892_v53, %v890_v52 }
 0x13c   : > { %vm702_vm6 = vcmp.gt.f32.partialorder %v631_v54, 0.0  ;;  %v734_v61 = vmul.f32 0.2, %v631_v54  ;;  %v635_v5 = vadd.f32 %v634_v47, %v1596_v4  ;;  %v1665_v38 = vpop.permute.xlu1 %856  ;;  %v747_v47 = vmul.f32 0.2, %v663_v34 }
 0x13d   : > { %v765_v55 = vsel %vm701_vm5, %v629_v39, %v733_v51  ;;  %vm703_vm7 = vcmp.gt.f32.partialorder %v633_v56, 0.0  ;;  %v735_v0 = vmul.f32 0.2, %v633_v56 }
 0x13e   : > { %v893_v59 = vmul.f32 %v1600_v8, %v765_v55  ;;  %v766_v2 = vsel %vm702_vm6, %v631_v54, %v734_v61  ;;  %vm704_vm8 = vcmp.gt.f32.partialorder %v635_v5, 0.0  ;;  %v736_v27 = vmul.f32 0.2, %v635_v5  ;;  %v1677_v55 = vpop.permute.xlu0 %373 }
 0x13f   : > { %v894_v19 = vmul.f32 %v1600_v8, %v766_v2  ;;  %v767_v20 = vsel %vm703_vm7, %v633_v56, %v735_v0  ;;  %v661_v8 = vadd.f32 %v1620_v21, %v1614_v15  ;;  %v665_v56 = vadd.f32 %v1624_v28, %v1626_v31 }
 0x140   : > { %v638_v62 = vpop.f32.mrb[8].mxu0  ;;  %v922_v63 = vadd.f32 %v921_v49, %v893_v59  ;;  %v1644_v1 = vpop.f32.mrb[8].mxu1  ;;  %v895_v26 = vmul.f32 %v1604_v10, %v767_v20  ;;  %v768_v37 = vsel %vm704_vm8, %v635_v5, %v736_v27  ;;  %v779_v2 = vsel %vm715_vm13, %v663_v34, %v747_v47 }
 0x141   : > { %v640_v3 = vpop.f32.mrb[9].mxu0  ;;  %v1647_v6 = vpop.f32.mrb[9].mxu1  ;;  %v943_v30 = vadd.f32 %v942_v58, %v894_v19  ;;  %v639_v4 = vadd.f32 %v638_v62, %v1598_v7  ;;  %v896_v18 = vmul.f32 %v1604_v10, %v768_v37  ;;  %v746_v24 = vmul.f32 0.2, %v661_v8 }
 0x142   : > { %v642_v17 = vpop.f32.mrb[10].mxu0  ;;  %v1650_v22 = vpop.f32.mrb[10].mxu1  ;;  %v923_v35 = vadd.f32 %v922_v63, %v895_v26  ;;  %v641_v44 = vadd.f32 %v640_v3, %v1598_v7  ;;  %vm714_vm11 = vcmp.gt.f32.partialorder %v661_v8, 0.0  ;;  %v669_v5 = vadd.f32 %v1630_v36, %v1639_v57 }
 0x143   : > { %v644_v23 = vpop.f32.mrb[11].mxu0  ;;  %v1655_v29 = vpop.f32.mrb[11].mxu1  ;;  %vm705_vm9 = vcmp.gt.f32.partialorder %v639_v4, 0.0  ;;  %v737_v39 = vmul.f32 0.2, %v639_v4  ;;  %v944_v43 = vadd.f32 %v943_v30, %v896_v18  ;;  %v643_v45 = vadd.f32 %v642_v17, %v1602_v9 }
 0x144   : > { %v645_v10 = vadd.f32 %v644_v23, %v1602_v9  ;;  %vm706_vm12 = vcmp.gt.f32.partialorder %v641_v44, 0.0  ;;  %v738_v53 = vmul.f32 0.2, %v641_v44  ;;  %v777_v9 = vsel %vm713_vm10, %v659_v25, %v745_v42  ;;  %v862_v23 = vpop.permute.xlu1 %861  ;;  %v379_v30 = vpop.permute.xlu0 %378 }
 0x145   : > { %v769_v49 = vsel %vm705_vm9, %v639_v4, %v737_v39  ;;  %vm707_vm14 = vcmp.gt.f32.partialorder %v643_v45, 0.0  ;;  %v739_v58 = vmul.f32 0.2, %v643_v45  ;;  %v778_v63 = vsel %vm714_vm11, %v661_v8, %v746_v24 }
 0x146   : > { %v897_v52 = vmul.f32 %v1608_v12, %v769_v49  ;;  %v770_v61 = vsel %vm706_vm12, %v641_v44, %v738_v53  ;;  %vm708_vm15 = vcmp.gt.f32.partialorder %v645_v10, 0.0  ;;  %v740_v28 = vmul.f32 0.2, %v645_v10 }
 0x147   : > { %v898_v0 = vmul.f32 %v1608_v12, %v770_v61  ;;  %v771_v3 = vsel %vm707_vm14, %v643_v45, %v739_v58  ;;  %vm716_vm0 = vcmp.gt.f32.partialorder %v665_v56, 0.0  ;;  %v748_v31 = vmul.f32 0.2, %v665_v56 }
 0x148   : > { %v648_v40 = vpop.f32.mrb[12].mxu0  ;;  %v1669_v15 = vpop.f32.mrb[12].mxu1  ;;  %v924_v59 = vadd.f32 %v923_v35, %v897_v52  ;;  %v899_v17 = vmul.f32 %v1612_v14, %v771_v3  ;;  %v671_v25 = vadd.f32 %v1632_v41, %v1639_v57  ;;  %v772_v12 = vsel %vm708_vm15, %v645_v10, %v740_v28 }
 0x149   : > { %v650_v21 = vpop.f32.mrb[13].mxu0  ;;  %v1672_v50 = vpop.f32.mrb[13].mxu1  ;;  %v945_v19 = vadd.f32 %v944_v43, %v898_v0  ;;  %v649_v20 = vadd.f32 %v648_v40, %v1606_v11  ;;  %v905_v4 = vmul.f32 %v1642_v60, %v777_v9  ;;  %v1694_v36 = vmul.f32 %v1642_v60, %v778_v63 }
 0x14a   : > { %v652_v51 = vpop.f32.mrb[14].mxu0  ;;  %v1675_v54 = vpop.f32.mrb[14].mxu1  ;;  %v925_v26 = vadd.f32 %v924_v59, %v899_v17  ;;  %v651_v27 = vadd.f32 %v650_v21, %v1606_v11  ;;  %v900_v8 = vmul.f32 %v1612_v14, %v772_v12  ;;  %v907_v34 = vmul.f32 %v1665_v38, %v779_v2 }
 0x14b   : > { %v654_v7 = vpop.f32.mrb[15].mxu0  ;;  %v1682_v62 = vpop.f32.mrb[15].mxu1  ;;  %vm709_vm1 = vcmp.gt.f32.partialorder %v649_v20, 0.0  ;;  %vm717_vm2 = vcmp.gt.f32.partialorder %v669_v5, 0.0  ;;  %v741_v35 = vmul.f32 0.2, %v649_v20  ;;  %v780_v41 = vsel %vm716_vm0, %v665_v56, %v748_v31 }
 0x14c   : > { %vm710_vm3 = vcmp.gt.f32.partialorder %v651_v27, 0.0  ;;  %v749_v57 = vmul.f32 0.2, %v669_v5  ;;  %v946_v37 = vadd.f32 %v945_v19, %v900_v8  ;;  %v742_v18 = vmul.f32 0.2, %v651_v27  ;;  %v867_v44 = vpop.permute.xlu1 %866  ;;  %v384_v47 = vpop.permute.xlu0 %383 }
 0x14d   : > { %v750_v11 = vmul.f32 0.2, %v671_v25  ;;  %v673_v39 = vadd.f32 %v1634_v46, %v1658_v33  ;;  %v773_v40 = vsel %vm709_vm1, %v649_v20, %v741_v35  ;;  %v653_v60 = vadd.f32 %v652_v51, %v1610_v13 }
 0x14e   : > { %vm718_vm4 = vcmp.gt.f32.partialorder %v671_v25, 0.0  ;;  %v679_v14 = vadd.f32 %v1644_v1, %v1677_v55  ;;  %v901_v42 = vmul.f32 %v1616_v16, %v773_v40  ;;  %v774_v43 = vsel %vm710_vm3, %v651_v27, %v742_v18 }
 0x14f   : > { %v908_v45 = vmul.f32 %v1665_v38, %v780_v41  ;;  %v902_v21 = vmul.f32 %v1616_v16, %v774_v43  ;;  %vm711_vm5 = vcmp.gt.f32.partialorder %v653_v60, 0.0  ;;  %v743_v24 = vmul.f32 0.2, %v653_v60 }
 0x150   : > { %v781_v46 = vsel %vm717_vm2, %v669_v5, %v749_v57  ;;  %v675_v49 = vadd.f32 %v1636_v48, %v1658_v33  ;;  %v926_v10 = vadd.f32 %v925_v26, %v901_v42  ;;  %v655_v51 = vadd.f32 %v654_v7, %v1610_v13  ;;  %v872_v7 = vpop.permute.xlu1 %871  ;;  %v389_v2 = vpop.permute.xlu0 %388 }
 0x151   : > { %v782_v1 = vsel %vm718_vm4, %v671_v25, %v750_v11  ;;  %v751_v52 = vmul.f32 0.2, %v673_v39  ;;  %v947_v53 = vadd.f32 %v946_v37, %v902_v21  ;;  %v775_v56 = vsel %vm711_vm5, %v653_v60, %v743_v24 }
 0x152   : > { %vm719_vm6 = vcmp.gt.f32.partialorder %v673_v39, 0.0  ;;  %v753_v58 = vmul.f32 0.2, %v679_v14  ;;  %v681_v16 = vadd.f32 %v1647_v6, %v1677_v55  ;;  %v903_v38 = vmul.f32 %v1628_v32, %v775_v56 }
 0x153   : > { %vm721_vm7 = vcmp.gt.f32.partialorder %v679_v14, 0.0  ;;  %v683_v9 = vadd.f32 %v1650_v22, %v379_v30  ;;  %vm712_vm8 = vcmp.gt.f32.partialorder %v655_v51, 0.0  ;;  %v744_v59 = vmul.f32 0.2, %v655_v51 }
 0x154   : > { %v909_v48 = vmul.f32 %v862_v23, %v781_v46  ;;  %v910_v33 = vmul.f32 %v862_v23, %v782_v1  ;;  %vm720_vm9 = vcmp.gt.f32.partialorder %v675_v49, 0.0  ;;  %v927_v13 = vadd.f32 %v926_v10, %v903_v38  ;;  %v877_v8 = vpop.permute.xlu1 %876  ;;  %v882_v40 = vpop.permute.xlu0 %881 }
 0x155   : > { %v783_v61 = vsel %vm719_vm6, %v673_v39, %v751_v52  ;;  %v752_v63 = vmul.f32 0.2, %v675_v49  ;;  %v689_v0 = vadd.f32 %v1669_v15, %v384_v47  ;;  %v776_v3 = vsel %vm712_vm8, %v655_v51, %v744_v59 }
 0x156   : > { %v785_v5 = vsel %vm721_vm7, %v679_v14, %v753_v58  ;;  %v754_v6 = vmul.f32 0.2, %v681_v16  ;;  %v928_v55 = vadd.f32 %v927_v13, %v905_v4  ;;  %v904_v17 = vmul.f32 %v1628_v32, %v776_v3 }
 0x157   : > { %vm722_vm10 = vcmp.gt.f32.partialorder %v681_v16, 0.0  ;;  %v755_v22 = vmul.f32 0.2, %v683_v9  ;;  %v685_v28 = vadd.f32 %v1655_v29, %v379_v30  ;;  %v693_v31 = vadd.f32 %v1675_v54, %v389_v2 }
 0x158   : > { %v911_v19 = vmul.f32 %v867_v44, %v783_v61  ;;  %vm723_vm11 = vcmp.gt.f32.partialorder %v683_v9, 0.0  ;;  %v929_v20 = vadd.f32 %v928_v55, %v907_v34  ;;  %v948_v23 = vadd.f32 %v947_v53, %v904_v17  ;;  %v887_v24 = vpop.permute.xlu1 %886 }
 0x159   : > { %v784_v25 = vsel %vm720_vm9, %v675_v49, %v752_v63  ;;  %v913_v15 = vmul.f32 %v872_v7, %v785_v5  ;;  %v757_v26 = vmul.f32 0.2, %v689_v0  ;;  %v691_v12 = vadd.f32 %v1672_v50, %v384_v47 }
 0x15a   : > { %v786_v27 = vsel %vm722_vm10, %v681_v16, %v754_v6  ;;  %vm725_vm12 = vcmp.gt.f32.partialorder %v689_v0, 0.0  ;;  %v930_v4 = vadd.f32 %v929_v20, %v909_v48  ;;  %v949_v32 = vadd.f32 %v948_v23, %v1694_v36 }
 0x15b   : > { %v787_v35 = vsel %vm723_vm11, %v683_v9, %v755_v22  ;;  %v756_v29 = vmul.f32 0.2, %v685_v28  ;;  %v759_v30 = vmul.f32 0.2, %v693_v31  ;;  %v695_v54 = vadd.f32 %v1682_v62, %v389_v2 }
 0x15c   : > { %vm724_vm13 = vcmp.gt.f32.partialorder %v685_v28, 0.0  ;;  %vm727_vm14 = vcmp.gt.f32.partialorder %v693_v31, 0.0  ;;  %v931_v34 = vadd.f32 %v930_v4, %v911_v19  ;;  %v950_v41 = vadd.f32 %v949_v32, %v908_v45 }
 0x15d   : > { %v912_v57 = vmul.f32 %v867_v44, %v784_v25  ;;  %v789_v37 = vsel %vm725_vm12, %v689_v0, %v757_v26  ;;  %v758_v18 = vmul.f32 0.2, %v691_v12  ;;  %v915_v11 = vmul.f32 %v877_v8, %v787_v35 }
 0x15e   : > { %vm726_vm15 = vcmp.gt.f32.partialorder %v691_v12, 0.0  ;;  %v932_v50 = vadd.f32 %v931_v34, %v913_v15  ;;  %v951_v39 = vadd.f32 %v950_v41, %v910_v33  ;;  %v914_v60 = vmul.f32 %v872_v7, %v786_v27 }
 0x15f   : > { %v788_v36 = vsel %vm724_vm13, %v685_v28, %v756_v29  ;;  %v791_v14 = vsel %vm727_vm14, %v693_v31, %v759_v30  ;;  %v760_v42 = vmul.f32 0.2, %v695_v54  ;;  %v917_v43 = vmul.f32 %v882_v40, %v789_v37 }
 0x160   : > { %v933_v21 = vadd.f32 %v932_v50, %v915_v11  ;;  %vm728_vm0 = vcmp.gt.f32.partialorder %v695_v54, 0.0  ;;  %v952_v62 = vadd.f32 %v951_v39, %v912_v57  ;;  %v790_v47 = vsel %vm726_vm15, %v691_v12, %v758_v18 }
 0x161   : > { %v916_v46 = vmul.f32 %v877_v8, %v788_v36  ;;  %v919_v45 = vmul.f32 %v887_v24, %v791_v14  ;;  %v792_v10 = vsel %vm728_vm0, %v695_v54, %v760_v42  ;;  %v918_v51 = vmul.f32 %v882_v40, %v790_v47 }
 0x162   : > { %v934_v44 = vadd.f32 %v933_v21, %v917_v43  ;;  %v953_v49 = vadd.f32 %v952_v62, %v914_v60  ;;  %v920_v56 = vmul.f32 %v887_v24, %v792_v10  ;;  %v964_v61 = vstv %s963_s9 }
 0x163   : > { %v1323_v25 = vmov 1966171168   ;;  %v983_v26 = vlaneseq }
 0x164   : > { %v935_v1 = vadd.f32 %v934_v44, %v919_v45  ;;  %v954_v52 = vadd.f32 %v953_v49, %v916_v46  ;;  %v981_v15 = vunpack.c.l.s4 %v1323_v25 }
 0x165   : > { %v984_v27 = vshrl.u32 %v983_v26, 7  ;;  %vm997_vm1 = vcmp.lt.s32.totalorder %v983_v26, 256 }
 0x166   : > { %v936_v53 = vrot.slane %v935_v1, 4  ;;  %v955_v58 = vadd.f32 %v954_v52, %v918_v51  ;;  %v982_v12 = vunpack.c.0.s8 %v981_v15 }
 0x168   : > { %v937_v16 = vadd.f32 %v936_v53, %v935_v1  ;;  %v956_v38 = vadd.f32 %v955_v58, %v920_v56  ;;  %v985_v32 = vsub.s32 %v982_v12, %v984_v27 }
 0x16a   : > { %v938_v9 = vrot.slane %v937_v16, 2  ;;  %v957_v59 = vrot.slane %v956_v38, 4 }
 0x16c   : > { %v939_v48 = vadd.f32 %v938_v9, %v937_v16  ;;  %v958_v33 = vadd.f32 %v957_v59, %v956_v38 }
 0x16e   : > { %v940_v13 = vrot.slane %v939_v48, 1  ;;  %v959_v7 = vrot.slane %v958_v33, 2 }
 0x170   : > { %v941_v63 = vadd.f32 %v940_v13, %v939_v48  ;;  %v960_v0 = vadd.f32 %v959_v7, %v958_v33 }
 0x172   : > { %v965_v3 = vadd.f32 %v964_v61, %v941_v63  ;;  %v961_v2 = vrot.slane %v960_v0, 1 }
 0x174   : > { %v967_v5 = vsub.f32 0.0, %v965_v3  ;;  %v962_v6 = vadd.f32 %v961_v2, %v960_v0 }
 0x176   : > { %v969_v55 = vmul.f32 1.442695, %v967_v5  ;;  %v966_v17 = vadd.f32 %v964_v61, %v962_v6 }
 0x178   : > { %1250 = vpow2.f32 %v969_v55  ;;  %v968_v22 = vsub.f32 0.0, %v966_v17 }
 0x17a   : > { %v971_v28 = vmul.f32 1.442695, %v968_v22 }
 0x17c   : > { %1252 = vpow2.f32 %v971_v28 }
 0x182   : > { %v1251_v31 = vpop.eup %1250 }
 0x183   : > { %v973_v19 = vadd.f32 1.0, %v1251_v31 }
 0x185   : > { %1254 = vrcp.f32 %v973_v19 }
 0x186   : > { %v1253_v20 = vpop.eup %1252 }
 0x187   : > { %v974_v23 = vadd.f32 1.0, %v1253_v20 }
 0x189   : > { %1256 = vrcp.f32 %v974_v23 }
 0x18f   : > { %v1255_v4 = vpop.eup %1254 }
 0x193   : > { %v1257_v8 = vpop.eup %1256 }
 0x194   : > { %v979_v35 = vcombine.low %v1255_v4, %v1257_v8 }
 0x196   : > { %v986_v29 = vrot.slane %v979_v35, %v985_v32 }
 0x198   : > { %v993_v30 = vrot.slane %v986_v29, %v985_v32 }
 0x19a   : > { %999 = vst.msk [vmem:[%s231_s12] sm:$0x3] %vm997_vm1, %v993_v30 }
 0x19b   : > { %1271 = shalt.err (!%p1268_p3)
}
 0x19c   : > { %s1272_s6 = scalar_lea.hbm %s1728_s16, 32  ;;  %s1276_s7 = scalar_lea.hbm %s1775_s5, 64 }
 0x19d   : > { %p1273_p4 = scmp.ne.s32.totalorder %s1728_s16, %s1272_s6  ;;  %p1277_p9 = scmp.lt.u32.totalorder %s1728_s16, %s1775_s5 }
 0x19e   : > { %p1278_p10 = scmp.lt.u32.totalorder %s1276_s7, %s1272_s6  ;;  %p1280_p12 = scmp.lt.u32.totalorder %s1272_s6, %s1728_s16 }
 0x19f   : > { %p1274_p7 = pnand %p1273_p4, %p1393_p5 }
 0x1a0   : > { %p1279_p11 = por %p1278_p10, %p1277_p9 }
 0x1a1   : > { %p1275_p8 = pneg %p1274_p7 }
 0x1a2   : > { %p1281_p13 = por %p1280_p12, %p1279_p11 }
 0x1a4   : > { %p1282_p0 = pnand %p1281_p13, %p1275_p8 }
 0x1a6   : > { %1285 = shalt.err (!%p1282_p0)
}
 0x1a7   : > { %1183 = dma.vmem_to_hbm [thread:$0]  (%p1393_p5), %s1730_s13, 32, %s1728_s16, %s1001_s17  }
 0x1a8 PF: > { %p1189_p1 = scmp.ge.s32.totalorder %s1320_s23, 2  ;;  %s1027_s10 = sand.u32 1, %s1308_s20  }
 0x1a9   : > { %s1028_s11 = scalar_lea.sflag [#allocation4], %s1027_s10 }
 0x1aa   : > { %p1186_p2 = pnand %p1189_p1, %p1397_p6 }
 0x1ac   : > { %1303 = dma.done.wait (!%p1186_p2), %s1028_s11, 32  }
 0x1ad   : > { %1305 = vsyncadd (!%p1186_p2), %s1028_s11, 4294967264  ;;  %p16_p3 = scmp.ge.s32.totalorder %s1381_s25, 4   ;;  %s1778_s20 = smov %s1312_s21 }
 0x1ae   : > { %s1779_s21 = smov %s1316_s22  ;;  %s1780_s22 = smov %s1391_s28 }
 0x1af   : > { %s1781_s23 = smov %s1381_s25  ;;  %18 = sbr.rel (!%p16_p3) target bundleno = 5 (0x5), region = 75 }
 0x1b6   :  { %1033 = vsyncpa [#allocation4], 1 }
 0x1b7   :  { %1035 = vsyncpa [#allocation4 + $0x1], 1 }

</bundles_post_ra>
